<compile_context>
chip_gen: v6e
topology: v6e:2x2x1
jax: 0.10.0
libtpu: 0.0.40
codegen_flags: <defaults>
</compile_context>

<pallas_src>
import functools

import jax
import jax.numpy as jnp
import numpy as np
from jax.experimental import pallas as pl
from jax.experimental.pallas import tpu as pltpu

_I32_MAX = int(np.iinfo(np.int32).max)
_I32_MIN = int(np.iinfo(np.int32).min)


def _round_up(x, m):
    return ((x + m - 1) // m) * m


def _bitonic_kernel(x_ref, o_ref, *, seg, n_valid, descending, is_float):
    """Sort every `seg`-wide lane segment of the (block_rows, W) tile."""
    W = x_ref.shape[-1]
    x = x_ref[...]

    # ---- one-time encode: order-preserving int32 keys ----
    if is_float:
        b = pltpu.bitcast(x, jnp.int32)
        keys = b ^ ((b >> 31) & jnp.int32(0x7FFFFFFF))
    else:
        keys = x

    lane = jax.lax.broadcasted_iota(jnp.int32, keys.shape, keys.ndim - 1)
    p = lane & (seg - 1)  # position within the packed segment (seg is a pow2)

    # Padded tail lanes of each segment sort to the end and get sliced off later.
    if n_valid != seg:
        pad_key = _I32_MIN if descending else _I32_MAX
        keys = jnp.where(p < n_valid, keys, jnp.int32(pad_key))

    # ---- bitonic sorting network (statically unrolled; 10 rounds for seg=16).
    # TODO(synk): for very large seg (>~512) a lax.fori_loop over rounds would
    # avoid code bloat, but roll shifts must stay static so we keep the unroll.
    k = 2
    while k <= seg:
        j = k // 2
        while j >= 1:
            is_lower = (p & j) == 0            # partner sits +j lanes away
            m = p & (k + j)                    # bits k and j of the position
            if descending:                     # flip every comparator
                take_min = (m == j) | (m == k)
            else:
                take_min = (m == 0) | (m == (k + j))
            right = pltpu.roll(keys, shift=W - j, axis=keys.ndim - 1)  # keys[i+j]
            left = pltpu.roll(keys, shift=j, axis=keys.ndim - 1)       # keys[i-j]
            partner = jnp.where(is_lower, right, left)
            keys = jnp.where(take_min,
                             jnp.minimum(keys, partner),
                             jnp.maximum(keys, partner))
            j //= 2
        k *= 2

    # ---- one-time decode ----
    if is_float:
        b = keys ^ ((keys >> 31) & jnp.int32(0x7FFFFFFF))
        o_ref[...] = pltpu.bitcast(b, jnp.float32)
    else:
        o_ref[...] = keys


def _choose_block_rows(R, W):
    # ~1 MiB per block buffer; in+out double-buffered stays well under VMEM limits.
    max_rows = max(8, (1 << 20) // (W * 4))
    max_rows = min((max_rows // 8) * 8, 1024)
    block_rows = min(max_rows, _round_up(R, 8))
    # If everything would fit in a single block but there is enough work, split it
    # so the 'parallel' grid axis has >=2 programs (lets v7x use both TensorCores).
    if block_rows >= R and R >= 16:
        block_rows = max(8, _round_up((R + 1) // 2, 8))
    return block_rows


def _sort_rows(x2d, descending):
    """Sort each row of a 2-D array along the last axis with a Pallas kernel."""
    rows, n = x2d.shape
    orig_dtype = x2d.dtype

    if jnp.issubdtype(orig_dtype, jnp.floating):
        # TODO(synk): f64 (with x64 enabled) is demoted to f32 here.
        work = x2d.astype(jnp.float32)
        is_float = True
    elif jnp.issubdtype(orig_dtype, jnp.signedinteger):
        work = x2d.astype(jnp.int32)
        is_float = False
    else:
        # TODO(synk): unsigned / bool / 64-bit integer dtypes not handled in-kernel.
        srt = jnp.sort(x2d, axis=-1)
        return srt[:, ::-1] if descending else srt

    seg = 1 << max(1, (n - 1).bit_length())      # next power of two >= n
    if seg != n:
        work = jnp.pad(work, ((0, 0), (0, seg - n)))

    # Lane-pack g independent segments per 128-lane vreg row.
    if seg <= 128:
        g, W = 128 // seg, 128
    else:
        g, W = 1, seg
    rows_p = _round_up(rows, g)
    if rows_p != rows:
        work = jnp.pad(work, ((0, rows_p - rows), (0, 0)))
    R = rows_p // g
    packed = work.reshape(R, W)

    block_rows = _choose_block_rows(R, W)
    Rp = _round_up(R, block_rows)
    if Rp != R:
        packed = jnp.pad(packed, ((0, Rp - R), (0, 0)))

    kernel = functools.partial(
        _bitonic_kernel, seg=seg, n_valid=n, descending=descending,
        is_float=is_float)

    out = pl.pallas_call(
        kernel,
        out_shape=jax.ShapeDtypeStruct((Rp, W), packed.dtype),
        grid_spec=pltpu.PrefetchScalarGridSpec(
            num_scalar_prefetch=0,
            grid=(Rp // block_rows,),
            in_specs=[pl.BlockSpec((block_rows, W), lambda i: (i, 0))],
            out_specs=pl.BlockSpec((block_rows, W), lambda i: (i, 0)),
        ),
        compiler_params=pltpu.CompilerParams(
            dimension_semantics=("parallel",),
            vmem_limit_bytes=32 * 1024 * 1024,
        ),
    )(packed)

    out = out[:R].reshape(rows_p, seg)[:rows, :n]
    return out.astype(orig_dtype)


def sort_layer(x, dim=-1, descending=False):
    """Pallas equivalent of SortLayer.forward: sorted values of x along `dim`."""
    ndim = x.ndim
    dim = dim % ndim
    if x.shape[dim] <= 1:
        return x
    xt = jnp.moveaxis(x, dim, -1)
    lead = xt.shape[:-1]
    n = xt.shape[-1]
    out2d = _sort_rows(xt.reshape(-1, n), bool(descending))
    return jnp.moveaxis(out2d.reshape(*lead, n), -1, dim)


if __name__ == "__main__":
    key = jax.random.PRNGKey(0)
    # NCHW input; SortLayer defaults: dim=-1, descending=False.
    x = jax.random.normal(key, (2, 4, 16, 16), dtype=jnp.float32)

    out = jax.block_until_ready(sort_layer(x, dim=-1, descending=False))
    ref = jnp.sort(x, axis=-1)
    np.testing.assert_allclose(np.asarray(out), np.asarray(ref), rtol=0, atol=0)

    # Extra coverage: descending along an interior dim (values-only is exact).
    out_d = jax.block_until_ready(sort_layer(x, dim=1, descending=True))
    ref_d = jnp.flip(jnp.sort(x, axis=1), axis=1)
    np.testing.assert_allclose(np.asarray(out_d), np.asarray(ref_d), rtol=0, atol=0)

    print("KERNEL_OK")
</pallas_src>

<mosaic_0001>
module attributes {stable_mosaic.version = 11 : i64} {
  func.func @_bitonic_kernel(%arg0: i32, %arg1: memref<8x128xf32, #tpu.memory_space<vmem>>, %arg2: memref<8x128xf32, #tpu.memory_space<vmem>>) attributes {dimension_semantics = [#tpu.dimension_semantics<parallel>], iteration_bounds = array<i64: 2>, scalar_prefetch = 0 : i64, scratch_operands = 0 : i64, tpu.core_type = #tpu.core_type<tc>, window_params = [{transform_indices = @transform_0, window_bounds = array<i64: 8, 128>}, {transform_indices = @transform_1, window_bounds = array<i64: 8, 128>}]} {
    %c0 = arith.constant 0 : index
    %c0_0 = arith.constant 0 : index
    %0 = vector.load %arg1[%c0, %c0_0] : memref<8x128xf32, #tpu.memory_space<vmem>>, vector<8x128xf32>
    %1 = tpu.bitcast %0 : vector<8x128xf32> -> vector<8x128xi32>
    %c31_i32 = arith.constant 31 : i32
    %2 = vector.broadcast %c31_i32 : i32 to vector<8x128xi32>
    %3 = arith.shrsi %1, %2 : vector<8x128xi32>
    %c2147483647_i32 = arith.constant 2147483647 : i32
    %4 = vector.broadcast %c2147483647_i32 : i32 to vector<8x128xi32>
    %5 = arith.andi %3, %4 : vector<8x128xi32>
    %6 = arith.xori %1, %5 : vector<8x128xi32>
    %7 = tpu.iota {dimensions = array<i32: 1>} : vector<8x128xi32>
    %c15_i32 = arith.constant 15 : i32
    %8 = vector.broadcast %c15_i32 : i32 to vector<8x128xi32>
    %9 = arith.andi %7, %8 : vector<8x128xi32>
    %c1_i32 = arith.constant 1 : i32
    %10 = vector.broadcast %c1_i32 : i32 to vector<8x128xi32>
    %11 = arith.andi %9, %10 : vector<8x128xi32>
    %c0_i32 = arith.constant 0 : i32
    %12 = vector.broadcast %c0_i32 : i32 to vector<8x128xi32>
    %13 = arith.cmpi eq, %11, %12 : vector<8x128xi32>
    %c3_i32 = arith.constant 3 : i32
    %14 = vector.broadcast %c3_i32 : i32 to vector<8x128xi32>
    %15 = arith.andi %9, %14 : vector<8x128xi32>
    %c0_i32_1 = arith.constant 0 : i32
    %16 = vector.broadcast %c0_i32_1 : i32 to vector<8x128xi32>
    %17 = arith.cmpi eq, %15, %16 : vector<8x128xi32>
    %c3_i32_2 = arith.constant 3 : i32
    %18 = vector.broadcast %c3_i32_2 : i32 to vector<8x128xi32>
    %19 = arith.cmpi eq, %15, %18 : vector<8x128xi32>
    %20 = arith.ori %17, %19 : vector<8x128xi1>
    %c127_i32 = arith.constant 127 : i32
    %21 = tpu.dynamic_rotate %6 by %c127_i32 dim 1 : vector<8x128xi32>, i32 -> vector<8x128xi32>
    %c1_i32_3 = arith.constant 1 : i32
    %22 = tpu.dynamic_rotate %6 by %c1_i32_3 dim 1 : vector<8x128xi32>, i32 -> vector<8x128xi32>
    %23 = arith.select %13, %21, %22 : vector<8x128xi1>, vector<8x128xi32>
    %24 = arith.minsi %6, %23 : vector<8x128xi32>
    %25 = arith.maxsi %6, %23 : vector<8x128xi32>
    %26 = arith.select %20, %24, %25 : vector<8x128xi1>, vector<8x128xi32>
    %c2_i32 = arith.constant 2 : i32
    %27 = vector.broadcast %c2_i32 : i32 to vector<8x128xi32>
    %28 = arith.andi %9, %27 : vector<8x128xi32>
    %c0_i32_4 = arith.constant 0 : i32
    %29 = vector.broadcast %c0_i32_4 : i32 to vector<8x128xi32>
    %30 = arith.cmpi eq, %28, %29 : vector<8x128xi32>
    %c6_i32 = arith.constant 6 : i32
    %31 = vector.broadcast %c6_i32 : i32 to vector<8x128xi32>
    %32 = arith.andi %9, %31 : vector<8x128xi32>
    %c0_i32_5 = arith.constant 0 : i32
    %33 = vector.broadcast %c0_i32_5 : i32 to vector<8x128xi32>
    %34 = arith.cmpi eq, %32, %33 : vector<8x128xi32>
    %c6_i32_6 = arith.constant 6 : i32
    %35 = vector.broadcast %c6_i32_6 : i32 to vector<8x128xi32>
    %36 = arith.cmpi eq, %32, %35 : vector<8x128xi32>
    %37 = arith.ori %34, %36 : vector<8x128xi1>
    %c126_i32 = arith.constant 126 : i32
    %38 = tpu.dynamic_rotate %26 by %c126_i32 dim 1 : vector<8x128xi32>, i32 -> vector<8x128xi32>
    %c2_i32_7 = arith.constant 2 : i32
    %39 = tpu.dynamic_rotate %26 by %c2_i32_7 dim 1 : vector<8x128xi32>, i32 -> vector<8x128xi32>
    %40 = arith.select %30, %38, %39 : vector<8x128xi1>, vector<8x128xi32>
    %41 = arith.minsi %26, %40 : vector<8x128xi32>
    %42 = arith.maxsi %26, %40 : vector<8x128xi32>
    %43 = arith.select %37, %41, %42 : vector<8x128xi1>, vector<8x128xi32>
    %c1_i32_8 = arith.constant 1 : i32
    %44 = vector.broadcast %c1_i32_8 : i32 to vector<8x128xi32>
    %45 = arith.andi %9, %44 : vector<8x128xi32>
    %c0_i32_9 = arith.constant 0 : i32
    %46 = vector.broadcast %c0_i32_9 : i32 to vector<8x128xi32>
    %47 = arith.cmpi eq, %45, %46 : vector<8x128xi32>
    %c5_i32 = arith.constant 5 : i32
    %48 = vector.broadcast %c5_i32 : i32 to vector<8x128xi32>
    %49 = arith.andi %9, %48 : vector<8x128xi32>
    %c0_i32_10 = arith.constant 0 : i32
    %50 = vector.broadcast %c0_i32_10 : i32 to vector<8x128xi32>
    %51 = arith.cmpi eq, %49, %50 : vector<8x128xi32>
    %c5_i32_11 = arith.constant 5 : i32
    %52 = vector.broadcast %c5_i32_11 : i32 to vector<8x128xi32>
    %53 = arith.cmpi eq, %49, %52 : vector<8x128xi32>
    %54 = arith.ori %51, %53 : vector<8x128xi1>
    %c127_i32_12 = arith.constant 127 : i32
    %55 = tpu.dynamic_rotate %43 by %c127_i32_12 dim 1 : vector<8x128xi32>, i32 -> vector<8x128xi32>
    %c1_i32_13 = arith.constant 1 : i32
    %56 = tpu.dynamic_rotate %43 by %c1_i32_13 dim 1 : vector<8x128xi32>, i32 -> vector<8x128xi32>
    %57 = arith.select %47, %55, %56 : vector<8x128xi1>, vector<8x128xi32>
    %58 = arith.minsi %43, %57 : vector<8x128xi32>
    %59 = arith.maxsi %43, %57 : vector<8x128xi32>
    %60 = arith.select %54, %58, %59 : vector<8x128xi1>, vector<8x128xi32>
    %c4_i32 = arith.constant 4 : i32
    %61 = vector.broadcast %c4_i32 : i32 to vector<8x128xi32>
    %62 = arith.andi %9, %61 : vector<8x128xi32>
    %c0_i32_14 = arith.constant 0 : i32
    %63 = vector.broadcast %c0_i32_14 : i32 to vector<8x128xi32>
    %64 = arith.cmpi eq, %62, %63 : vector<8x128xi32>
    %c12_i32 = arith.constant 12 : i32
    %65 = vector.broadcast %c12_i32 : i32 to vector<8x128xi32>
    %66 = arith.andi %9, %65 : vector<8x128xi32>
    %c0_i32_15 = arith.constant 0 : i32
    %67 = vector.broadcast %c0_i32_15 : i32 to vector<8x128xi32>
    %68 = arith.cmpi eq, %66, %67 : vector<8x128xi32>
    %c12_i32_16 = arith.constant 12 : i32
    %69 = vector.broadcast %c12_i32_16 : i32 to vector<8x128xi32>
    %70 = arith.cmpi eq, %66, %69 : vector<8x128xi32>
    %71 = arith.ori %68, %70 : vector<8x128xi1>
    %c124_i32 = arith.constant 124 : i32
    %72 = tpu.dynamic_rotate %60 by %c124_i32 dim 1 : vector<8x128xi32>, i32 -> vector<8x128xi32>
    %c4_i32_17 = arith.constant 4 : i32
    %73 = tpu.dynamic_rotate %60 by %c4_i32_17 dim 1 : vector<8x128xi32>, i32 -> vector<8x128xi32>
    %74 = arith.select %64, %72, %73 : vector<8x128xi1>, vector<8x128xi32>
    %75 = arith.minsi %60, %74 : vector<8x128xi32>
    %76 = arith.maxsi %60, %74 : vector<8x128xi32>
    %77 = arith.select %71, %75, %76 : vector<8x128xi1>, vector<8x128xi32>
    %c2_i32_18 = arith.constant 2 : i32
    %78 = vector.broadcast %c2_i32_18 : i32 to vector<8x128xi32>
    %79 = arith.andi %9, %78 : vector<8x128xi32>
    %c0_i32_19 = arith.constant 0 : i32
    %80 = vector.broadcast %c0_i32_19 : i32 to vector<8x128xi32>
    %81 = arith.cmpi eq, %79, %80 : vector<8x128xi32>
    %c10_i32 = arith.constant 10 : i32
    %82 = vector.broadcast %c10_i32 : i32 to vector<8x128xi32>
    %83 = arith.andi %9, %82 : vector<8x128xi32>
    %c0_i32_20 = arith.constant 0 : i32
    %84 = vector.broadcast %c0_i32_20 : i32 to vector<8x128xi32>
    %85 = arith.cmpi eq, %83, %84 : vector<8x128xi32>
    %c10_i32_21 = arith.constant 10 : i32
    %86 = vector.broadcast %c10_i32_21 : i32 to vector<8x128xi32>
    %87 = arith.cmpi eq, %83, %86 : vector<8x128xi32>
    %88 = arith.ori %85, %87 : vector<8x128xi1>
    %c126_i32_22 = arith.constant 126 : i32
    %89 = tpu.dynamic_rotate %77 by %c126_i32_22 dim 1 : vector<8x128xi32>, i32 -> vector<8x128xi32>
    %c2_i32_23 = arith.constant 2 : i32
    %90 = tpu.dynamic_rotate %77 by %c2_i32_23 dim 1 : vector<8x128xi32>, i32 -> vector<8x128xi32>
    %91 = arith.select %81, %89, %90 : vector<8x128xi1>, vector<8x128xi32>
    %92 = arith.minsi %77, %91 : vector<8x128xi32>
    %93 = arith.maxsi %77, %91 : vector<8x128xi32>
    %94 = arith.select %88, %92, %93 : vector<8x128xi1>, vector<8x128xi32>
    %c1_i32_24 = arith.constant 1 : i32
    %95 = vector.broadcast %c1_i32_24 : i32 to vector<8x128xi32>
    %96 = arith.andi %9, %95 : vector<8x128xi32>
    %c0_i32_25 = arith.constant 0 : i32
    %97 = vector.broadcast %c0_i32_25 : i32 to vector<8x128xi32>
    %98 = arith.cmpi eq, %96, %97 : vector<8x128xi32>
    %c9_i32 = arith.constant 9 : i32
    %99 = vector.broadcast %c9_i32 : i32 to vector<8x128xi32>
    %100 = arith.andi %9, %99 : vector<8x128xi32>
    %c0_i32_26 = arith.constant 0 : i32
    %101 = vector.broadcast %c0_i32_26 : i32 to vector<8x128xi32>
    %102 = arith.cmpi eq, %100, %101 : vector<8x128xi32>
    %c9_i32_27 = arith.constant 9 : i32
    %103 = vector.broadcast %c9_i32_27 : i32 to vector<8x128xi32>
    %104 = arith.cmpi eq, %100, %103 : vector<8x128xi32>
    %105 = arith.ori %102, %104 : vector<8x128xi1>
    %c127_i32_28 = arith.constant 127 : i32
    %106 = tpu.dynamic_rotate %94 by %c127_i32_28 dim 1 : vector<8x128xi32>, i32 -> vector<8x128xi32>
    %c1_i32_29 = arith.constant 1 : i32
    %107 = tpu.dynamic_rotate %94 by %c1_i32_29 dim 1 : vector<8x128xi32>, i32 -> vector<8x128xi32>
    %108 = arith.select %98, %106, %107 : vector<8x128xi1>, vector<8x128xi32>
    %109 = arith.minsi %94, %108 : vector<8x128xi32>
    %110 = arith.maxsi %94, %108 : vector<8x128xi32>
    %111 = arith.select %105, %109, %110 : vector<8x128xi1>, vector<8x128xi32>
    %c8_i32 = arith.constant 8 : i32
    %112 = vector.broadcast %c8_i32 : i32 to vector<8x128xi32>
    %113 = arith.andi %9, %112 : vector<8x128xi32>
    %c0_i32_30 = arith.constant 0 : i32
    %114 = vector.broadcast %c0_i32_30 : i32 to vector<8x128xi32>
    %115 = arith.cmpi eq, %113, %114 : vector<8x128xi32>
    %c24_i32 = arith.constant 24 : i32
    %116 = vector.broadcast %c24_i32 : i32 to vector<8x128xi32>
    %117 = arith.andi %9, %116 : vector<8x128xi32>
    %c0_i32_31 = arith.constant 0 : i32
    %118 = vector.broadcast %c0_i32_31 : i32 to vector<8x128xi32>
    %119 = arith.cmpi eq, %117, %118 : vector<8x128xi32>
    %c24_i32_32 = arith.constant 24 : i32
    %120 = vector.broadcast %c24_i32_32 : i32 to vector<8x128xi32>
    %121 = arith.cmpi eq, %117, %120 : vector<8x128xi32>
    %122 = arith.ori %119, %121 : vector<8x128xi1>
    %c120_i32 = arith.constant 120 : i32
    %123 = tpu.dynamic_rotate %111 by %c120_i32 dim 1 : vector<8x128xi32>, i32 -> vector<8x128xi32>
    %c8_i32_33 = arith.constant 8 : i32
    %124 = tpu.dynamic_rotate %111 by %c8_i32_33 dim 1 : vector<8x128xi32>, i32 -> vector<8x128xi32>
    %125 = arith.select %115, %123, %124 : vector<8x128xi1>, vector<8x128xi32>
    %126 = arith.minsi %111, %125 : vector<8x128xi32>
    %127 = arith.maxsi %111, %125 : vector<8x128xi32>
    %128 = arith.select %122, %126, %127 : vector<8x128xi1>, vector<8x128xi32>
    %c4_i32_34 = arith.constant 4 : i32
    %129 = vector.broadcast %c4_i32_34 : i32 to vector<8x128xi32>
    %130 = arith.andi %9, %129 : vector<8x128xi32>
    %c0_i32_35 = arith.constant 0 : i32
    %131 = vector.broadcast %c0_i32_35 : i32 to vector<8x128xi32>
    %132 = arith.cmpi eq, %130, %131 : vector<8x128xi32>
    %c20_i32 = arith.constant 20 : i32
    %133 = vector.broadcast %c20_i32 : i32 to vector<8x128xi32>
    %134 = arith.andi %9, %133 : vector<8x128xi32>
    %c0_i32_36 = arith.constant 0 : i32
    %135 = vector.broadcast %c0_i32_36 : i32 to vector<8x128xi32>
    %136 = arith.cmpi eq, %134, %135 : vector<8x128xi32>
    %c20_i32_37 = arith.constant 20 : i32
    %137 = vector.broadcast %c20_i32_37 : i32 to vector<8x128xi32>
    %138 = arith.cmpi eq, %134, %137 : vector<8x128xi32>
    %139 = arith.ori %136, %138 : vector<8x128xi1>
    %c124_i32_38 = arith.constant 124 : i32
    %140 = tpu.dynamic_rotate %128 by %c124_i32_38 dim 1 : vector<8x128xi32>, i32 -> vector<8x128xi32>
    %c4_i32_39 = arith.constant 4 : i32
    %141 = tpu.dynamic_rotate %128 by %c4_i32_39 dim 1 : vector<8x128xi32>, i32 -> vector<8x128xi32>
    %142 = arith.select %132, %140, %141 : vector<8x128xi1>, vector<8x128xi32>
    %143 = arith.minsi %128, %142 : vector<8x128xi32>
    %144 = arith.maxsi %128, %142 : vector<8x128xi32>
    %145 = arith.select %139, %143, %144 : vector<8x128xi1>, vector<8x128xi32>
    %c2_i32_40 = arith.constant 2 : i32
    %146 = vector.broadcast %c2_i32_40 : i32 to vector<8x128xi32>
    %147 = arith.andi %9, %146 : vector<8x128xi32>
    %c0_i32_41 = arith.constant 0 : i32
    %148 = vector.broadcast %c0_i32_41 : i32 to vector<8x128xi32>
    %149 = arith.cmpi eq, %147, %148 : vector<8x128xi32>
    %c18_i32 = arith.constant 18 : i32
    %150 = vector.broadcast %c18_i32 : i32 to vector<8x128xi32>
    %151 = arith.andi %9, %150 : vector<8x128xi32>
    %c0_i32_42 = arith.constant 0 : i32
    %152 = vector.broadcast %c0_i32_42 : i32 to vector<8x128xi32>
    %153 = arith.cmpi eq, %151, %152 : vector<8x128xi32>
    %c18_i32_43 = arith.constant 18 : i32
    %154 = vector.broadcast %c18_i32_43 : i32 to vector<8x128xi32>
    %155 = arith.cmpi eq, %151, %154 : vector<8x128xi32>
    %156 = arith.ori %153, %155 : vector<8x128xi1>
    %c126_i32_44 = arith.constant 126 : i32
    %157 = tpu.dynamic_rotate %145 by %c126_i32_44 dim 1 : vector<8x128xi32>, i32 -> vector<8x128xi32>
    %c2_i32_45 = arith.constant 2 : i32
    %158 = tpu.dynamic_rotate %145 by %c2_i32_45 dim 1 : vector<8x128xi32>, i32 -> vector<8x128xi32>
    %159 = arith.select %149, %157, %158 : vector<8x128xi1>, vector<8x128xi32>
    %160 = arith.minsi %145, %159 : vector<8x128xi32>
    %161 = arith.maxsi %145, %159 : vector<8x128xi32>
    %162 = arith.select %156, %160, %161 : vector<8x128xi1>, vector<8x128xi32>
    %c1_i32_46 = arith.constant 1 : i32
    %163 = vector.broadcast %c1_i32_46 : i32 to vector<8x128xi32>
    %164 = arith.andi %9, %163 : vector<8x128xi32>
    %c0_i32_47 = arith.constant 0 : i32
    %165 = vector.broadcast %c0_i32_47 : i32 to vector<8x128xi32>
    %166 = arith.cmpi eq, %164, %165 : vector<8x128xi32>
    %c17_i32 = arith.constant 17 : i32
    %167 = vector.broadcast %c17_i32 : i32 to vector<8x128xi32>
    %168 = arith.andi %9, %167 : vector<8x128xi32>
    %c0_i32_48 = arith.constant 0 : i32
    %169 = vector.broadcast %c0_i32_48 : i32 to vector<8x128xi32>
    %170 = arith.cmpi eq, %168, %169 : vector<8x128xi32>
    %c17_i32_49 = arith.constant 17 : i32
    %171 = vector.broadcast %c17_i32_49 : i32 to vector<8x128xi32>
    %172 = arith.cmpi eq, %168, %171 : vector<8x128xi32>
    %173 = arith.ori %170, %172 : vector<8x128xi1>
    %c127_i32_50 = arith.constant 127 : i32
    %174 = tpu.dynamic_rotate %162 by %c127_i32_50 dim 1 : vector<8x128xi32>, i32 -> vector<8x128xi32>
    %c1_i32_51 = arith.constant 1 : i32
    %175 = tpu.dynamic_rotate %162 by %c1_i32_51 dim 1 : vector<8x128xi32>, i32 -> vector<8x128xi32>
    %176 = arith.select %166, %174, %175 : vector<8x128xi1>, vector<8x128xi32>
    %177 = arith.minsi %162, %176 : vector<8x128xi32>
    %178 = arith.maxsi %162, %176 : vector<8x128xi32>
    %179 = arith.select %173, %177, %178 : vector<8x128xi1>, vector<8x128xi32>
    %c31_i32_52 = arith.constant 31 : i32
    %180 = vector.broadcast %c31_i32_52 : i32 to vector<8x128xi32>
    %181 = arith.shrsi %179, %180 : vector<8x128xi32>
    %c2147483647_i32_53 = arith.constant 2147483647 : i32
    %182 = vector.broadcast %c2147483647_i32_53 : i32 to vector<8x128xi32>
    %183 = arith.andi %181, %182 : vector<8x128xi32>
    %184 = arith.xori %179, %183 : vector<8x128xi32>
    %185 = tpu.bitcast %184 : vector<8x128xi32> -> vector<8x128xf32>
    %c0_54 = arith.constant 0 : index
    %c0_55 = arith.constant 0 : index
    %186 = vector.load %arg2[%c0_54, %c0_55] : memref<8x128xf32, #tpu.memory_space<vmem>>, vector<8x128xf32>
    tpu.vector_store %arg2[%c0_54, %c0_55], %185 {strides = array<i32>} : memref<8x128xf32, #tpu.memory_space<vmem>>, vector<8x128xf32>,
    return
  }
  func.func @transform_0(%arg0: i32) -> (i32, i32) {
    %c0_i32 = arith.constant 0 : i32
    %c0_i32_0 = arith.constant 0 : i32
    return %arg0, %c0_i32 : i32, i32
  }
  func.func @transform_1(%arg0: i32) -> (i32, i32) {
    %c0_i32 = arith.constant 0 : i32
    %c0_i32_0 = arith.constant 0 : i32
    return %arg0, %c0_i32 : i32, i32
  }
}

</mosaic_0001>

<bundles_post_ra>
// kernel: tpu_custom_call.1
= control target key start
LH: loop header
LB: loop body
LE: loop exit
PB: predicated region body
PF: predicated region fallthrough
CT: control target
= control target key end

     0   :  { %6 = vsyncpa [#allocation3], 0  ;;  %s766_s0 = inlined_call_operand.hbm [shape: f32[16,128], index: 0, kind: input, shape index: {}]   ;;  %s767_s1 = inlined_call_operand.hbm [shape: f32[16,128], index: 1, kind: output, shape index: {}]  }
   0x1   :  { %8 = vsyncpa [#allocation3 + $0x1], 0 }
   0x2   :  { %9 = vsyncpa [#allocation4], 0 }
   0x3   :  { %11 = vsyncpa [#allocation4 + $0x1], 0  ;;  %s557_s6 = smov 0   ;;  %s559_s7 = smov 0  }
   0x4   :  { %s561_s8 = smov 0   ;;  %s563_s9 = smov 0  }
   0x5 LB: > { %s578_s10 = sadd.s32 4294967295, %s535_s9   ;;  %s377_s11 = sadd.s32 4294967294, %s535_s9   ;;  %s535_s9 = sphi %s563_s9, %s790_s9   ;;  %s531_s8 = sphi %s561_s8, %s789_s8   ;;  %s527_s7 = sphi %s559_s7, %s788_s7   ;;  %s523_s6 = sphi %s557_s6, %s787_s6  }
   0x6   : > { %s582_s12 = sadd.s32 1, %s535_s9   ;;  %s24_s13 = sadd.s32 1, %s531_s8 }
   0x7   : > { %s21_s14 = ssub.s32 %s535_s9, %s582_s12  ;;  %p31_p0 = scmp.ne.s32.totalorder %s531_s8, %s527_s7 }
   0x8   : > { %p22_p1 = scmp.eq.s32.totalorder %s21_s14, 0  ;;  %p32_p2 = scmp.eq.s32.totalorder %s535_s9, 0 }
   0x9   : > { %p37_p3 = scmp.ne.s32.totalorder %s527_s7, %s523_s6  ;;  %p38_p4 = scmp.eq.s32.totalorder %s578_s10, 0 }
   0xa   : > { %s594_s15 = scalar_select %p22_p1, %s531_s8, %s24_s13  }
   0xb   : > { %p596_p5 = por %p32_p2, %p31_p0  ;;  %p600_p6 = por %p38_p4, %p37_p3 }
   0xc   : > { %p61_p7 = scmp.eq.s32.totalorder %s578_s10, 1  ;;  %p67_p8 = scmp.eq.s32.totalorder %s377_s11, 1 }
   0xd   : > { %s771_s17 = scalar_select %p600_p6, 1, 0 }
   0xe   : > { %p401_p10 = scmp.lt.s32.totalorder %s535_s9, 2  ;;  %p607_p11 = por %p61_p7, %p31_p0 }
   0xf   : > { %p611_p12 = por %p67_p8, %p37_p3  ;;  %s87_s20 = sand.u32 1, %s531_s8  }
  0x10   : > { %s772_s18 = scalar_select %p607_p11, 1, 0 }
  0x11   : > { %s773_s19 = scalar_select %p611_p12, 1, 0 }
  0x12   : > { %s381_s21 = sshll.u32 %s535_s9, 7  ;;  %s380_s22 = sshll.u32 %s87_s20, 3 }
  0x13   : > { %s620_s25 = scalar_lea.hbm %s766_s0, %s381_s21  ;;  %s91_s26 = scalar_lea.vmem [#allocation2], %s380_s22 }
  0x14   : > { %s98_s27 = sshll.u32 %s91_s26, 4  ;;  %p624_p13 = pnand %p401_p10, %p596_p5  ;;  %s628_s27 = int_to_ptr.vmem [resolvable:$true] %s98_s27 }
  0x15   : > { %s88_s29 = scalar_lea.sflag [#allocation3], %s87_s20  ;;  %s443_s30 = scalar_lea.hbm %s620_s25, 128 }
  0x16   : > { %p444_p2 = scmp.ne.s32.totalorder %s620_s25, %s443_s30  ;;  %p445_p3 = pneg %p624_p13 }
  0x17   : > { %s448_s4 = scalar_lea.hbm %s766_s0, 256  ;;  %p449_p5 = scmp.lt.s32.totalorder %s620_s25, %s766_s0 }
  0x18   : > { %p446_p4 = pnand %p445_p3, %p444_p2  ;;  %p450_p8 = scmp.lt.s32.totalorder %s448_s4, %s443_s30 }
  0x1a   : > { %p447_p7 = pneg %p446_p4  ;;  %p451_p10 = por %p450_p8, %p449_p5 }
  0x1c   : > { %p452_p9 = pnand %p451_p10, %p447_p7 }
  0x1e   : > { %455 = shalt.err (!%p452_p9)
}
  0x1f   : > { %s456_s13 = scalar_lea.vmem %s628_s27, 128  ;;  %s537_s14 = smov [#allocation2]  }
  0x20   : > { %p457_p0 = scmp.ne.s32.totalorder %s628_s27, %s456_s13  ;;  %s461_s16 = sshll.u32 %s537_s14, 4  ;;  %s462_s16 = int_to_ptr.vmem [resolvable:$false] %s461_s16 }
  0x21   : > { %s463_s20 = scalar_lea.vmem %s462_s16, 256  ;;  %p464_p4 = scmp.lt.s32.totalorder %s628_s27, %s462_s16 }
  0x22   : > { %p459_p1 = pnand %p457_p0, %p445_p3  ;;  %p465_p12 = scmp.lt.s32.totalorder %s463_s20, %s456_s13 }
  0x24   : > { %p460_p2 = pneg %p459_p1  ;;  %p466_p11 = por %p465_p12, %p464_p4 }
  0x26   : > { %p467_p6 = pnand %p466_p11, %p460_p2 }
  0x28   : > { %470 = shalt.err (!%p467_p6)
}
  0x29   : > { %396 = dma.hbm_to_vmem [thread:$0]  (!%p624_p13), %s620_s25, 128, %s628_s27, %s88_s29  }
  0x2a   : > { %p775_p9 = scmp.lt.s32.totalorder %s535_s9, 3  ;;  %p776_p7 = scmp.ge.s32.totalorder %s535_s9, 1 }
  0x2c   : > { %p104_p0 = pnand %p776_p7, %p775_p9 }
  0x2d   : > { %s655_s21 = sand.u32 (!%p104_p0), 1, %s527_s7   ;;  %p777_p6 = scmp.ne.s32.totalorder (!%p104_p0), %s771_s17, 0 }
  0x2e   : > { %107 = sbr.rel (%p104_p0) target bundleno = 1276 (0x4fc), region = 24  ;;  %s383_s22 = sshll.u32 (!%p104_p0), %s655_s21, 3 }
  0x2f   : > { %s110_s23 = scalar_lea.sflag (!%p104_p0), [#allocation3], %s655_s21  ;;  %s113_s24 = scalar_lea.vmem (!%p104_p0), [#allocation2], %s383_s22 }
  0x33   : > { %514 = dma.done.wait (%p777_p6), %s110_s23, 128  }
  0x34   : > { %516 = vsyncadd (%p777_p6), %s110_s23, 4294967168  ;;  %v132_v0 = vld [vmem:[%s113_s24] sm:$0xff]  ;;  %s538_s25 = smov 127   ;;  %s539_s26 = smov 1   ;;  %v137_v4 = vlaneseq }
  0x35   : > { %v134_v1 = vshra.s32 %v132_v0, 31  ;;  %s540_s17 = smov 126   ;;  %s541_s27 = smov 2  }
  0x36   : > { %v138_v5 = vand.u32 127, %v137_v4  ;;  %s542_s28 = smov 4   ;;  %s543_s29 = smov 124  }
  0x37   : > { %v135_v2 = vand.u32 2147483647, %v134_v1  ;;  %s544_s30 = smov 8   ;;  %s545_s2 = smov 120  }
  0x38   : > { %v667_v6 = vand.u32 15, %v138_v5  ;;  %s386_s3 = sshll.u32 %s578_s10, 7  ;;  %s131_s4 = scalar_lea.vmem [#allocation5], %s383_s22 }
  0x39   : > { %v136_v3 = vxor.u32 %v135_v2, %v132_v0  ;;  %s307_s5 = sshll.u32 %s131_s4, 4  ;;  %s305_s14 = scalar_lea.hbm %s767_s1, %s386_s3  ;;  %s308_s5 = int_to_ptr.vmem [resolvable:$true] %s307_s5 }
  0x3a   : > { %v140_v7 = vand.u32 1, %v667_v6  ;;  %v142_v8 = vand.u32 3, %v667_v6  ;;  %v156_v16 = vand.u32 2, %v667_v6  ;;  %v158_v17 = vand.u32 6, %v667_v6  ;;  %s294_s16 = scalar_lea.sflag [#allocation4], %s655_s21  ;;  %s471_s20 = scalar_lea.vmem %s308_s5, 128 }
  0x3b   : > { %146 = vrot.lane.b32.xlu0 %v136_v3, %s538_s25  ;;  %v172_v25 = vand.u32 5, %v667_v6  ;;  %v186_v32 = vand.u32 4, %v667_v6  ;;  %v188_v33 = vand.u32 12, %v667_v6  ;;  %v202_v41 = vand.u32 10, %v667_v6  ;;  %p472_p11 = scmp.ne.s32.totalorder %s308_s5, %s471_s20  ;;  %p784_p12 = scmp.ne.s32.totalorder %s772_s18, 0 }
  0x3c   : > { %vm671_vm0 = vcmp.eq.s32.totalorder %v140_v7, 0  ;;  %vm143_vm1 = vcmp.eq.s32.totalorder %v142_v8, 0  ;;  %vm144_vm2 = vcmp.eq.s32.totalorder %v142_v8, 3  ;;  %vm681_vm6 = vcmp.eq.s32.totalorder %v156_v16, 0  ;;  %s546_s23 = smov [#allocation5]  }
  0x3d   : > { %vm145_vm3 = vmor %vm143_vm1, %vm144_vm2  ;;  %vm159_vm7 = vcmp.eq.s32.totalorder %v158_v17, 0  ;;  %vm160_vm8 = vcmp.eq.s32.totalorder %v158_v17, 6  ;;  %vm173_vm12 = vcmp.eq.s32.totalorder %v172_v25, 0  ;;  %vm174_vm13 = vcmp.eq.s32.totalorder %v172_v25, 5  ;;  %p473_p13 = pnand %p472_p11, %p784_p12  ;;  %s475_s24 = sshll.u32 %s546_s23, 4  ;;  %s476_s24 = int_to_ptr.vmem [resolvable:$false] %s475_s24 }
  0x3e   : > { %vm161_vm9 = vmor %vm159_vm7, %vm160_vm8  ;;  %vm696_vm2 = vcmp.eq.s32.totalorder %v186_v32, 0  ;;  %v216_v48 = vand.u32 9, %v667_v6  ;;  %v230_v55 = vand.u32 8, %v667_v6  ;;  %v232_v56 = vand.u32 24, %v667_v6  ;;  %s477_s10 = scalar_lea.vmem %s476_s24, 256  ;;  %p478_p3 = scmp.lt.s32.totalorder %s308_s5, %s476_s24 }
  0x3f   : > { %148 = vrot.lane.b32.xlu0 %v136_v3, %s539_s26  ;;  %vm175_vm14 = vmor %vm173_vm12, %vm174_vm13  ;;  %v246_v63 = vand.u32 20, %v667_v6  ;;  %v260_v7 = vand.u32 18, %v667_v6  ;;  %p474_p1 = pneg %p473_p13  ;;  %p479_p5 = scmp.lt.s32.totalorder %s477_s10, %s471_s20 }
  0x41   : > { %p480_p8 = por %p479_p5, %p478_p3 }
  0x43   : > { %p481_p10 = pnand %p480_p8, %p474_p1 }
  0xad   : > { %v147_v9 = vpop.permute.xlu0 %146 }
  0xb1   : > { %v149_v11 = vpop.permute.xlu0 %148 }
  0xb2   : > { %v150_v12 = vsel %vm671_vm0, %v147_v9, %v149_v11 }
  0xb3   : > { %vm151_vm4 = vcmp.lt.s32.totalorder %v136_v3, %v150_v12  ;;  %vm153_vm5 = vcmp.gt.s32.totalorder %v136_v3, %v150_v12 }
  0xb4   : > { %v152_v13 = vsel %vm151_vm4, %v136_v3, %v150_v12  ;;  %v154_v14 = vsel %vm153_vm5, %v136_v3, %v150_v12  ;;  %vm190_vm4 = vcmp.eq.s32.totalorder %v188_v33, 12 }
  0xb5   : > { %v155_v15 = vsel %vm145_vm3, %v152_v13, %v154_v14  ;;  %vm189_vm3 = vcmp.eq.s32.totalorder %v188_v33, 0 }
  0xb6   : > { %162 = vrot.lane.b32.xlu1 %v155_v15, %s540_s17  ;;  %vm191_vm5 = vmor %vm189_vm3, %vm190_vm4 }
  0xba   : > { %164 = vrot.lane.b32.xlu1 %v155_v15, %s541_s27 }
 0x128   : > { %v163_v18 = vpop.permute.xlu1 %162 }
 0x12c   : > { %v165_v20 = vpop.permute.xlu1 %164 }
 0x12d   : > { %v166_v21 = vsel %vm681_vm6, %v163_v18, %v165_v20 }
 0x12e   : > { %vm167_vm10 = vcmp.lt.s32.totalorder %v155_v15, %v166_v21  ;;  %vm169_vm11 = vcmp.gt.s32.totalorder %v155_v15, %v166_v21 }
 0x12f   : > { %v168_v22 = vsel %vm167_vm10, %v155_v15, %v166_v21  ;;  %v170_v23 = vsel %vm169_vm11, %v155_v15, %v166_v21  ;;  %vm204_vm10 = vcmp.eq.s32.totalorder %v202_v41, 10  ;;  %v274_v15 = vand.u32 17, %v667_v6 }
 0x130   : > { %v171_v24 = vsel %vm161_vm9, %v168_v22, %v170_v23  ;;  %vm203_vm9 = vcmp.eq.s32.totalorder %v202_v41, 0 }
 0x131   : > { %178 = vrot.lane.b32.xlu1 %v171_v24, %s539_s26  ;;  %176 = vrot.lane.b32.xlu0 %v171_v24, %s538_s25  ;;  %vm205_vm11 = vmor %vm203_vm9, %vm204_vm10  ;;  %vm247_vm10 = vcmp.eq.s32.totalorder %v246_v63, 0 }
 0x1a3   : > { %v179_v26 = vpop.permute.xlu1 %178  ;;  %v177_v27 = vpop.permute.xlu0 %176 }
 0x1a4   : > { %v180_v28 = vsel %vm671_vm0, %v177_v27, %v179_v26 }
 0x1a5   : > { %vm181_vm15 = vcmp.lt.s32.totalorder %v171_v24, %v180_v28  ;;  %vm183_vm1 = vcmp.gt.s32.totalorder %v171_v24, %v180_v28 }
 0x1a6   : > { %v182_v29 = vsel %vm181_vm15, %v171_v24, %v180_v28  ;;  %v184_v30 = vsel %vm183_vm1, %v171_v24, %v180_v28  ;;  %vm218_vm15 = vcmp.eq.s32.totalorder %v216_v48, 9 }
 0x1a7   : > { %v185_v31 = vsel %vm175_vm14, %v182_v29, %v184_v30  ;;  %vm217_vm14 = vcmp.eq.s32.totalorder %v216_v48, 0 }
 0x1a8   : > { %194 = vrot.lane.b32.xlu1 %v185_v31, %s542_s28  ;;  %192 = vrot.lane.b32.xlu0 %v185_v31, %s543_s29  ;;  %vm219_vm1 = vmor %vm217_vm14, %vm218_vm15 }
 0x21a   : > { %v195_v35 = vpop.permute.xlu1 %194  ;;  %v193_v36 = vpop.permute.xlu0 %192 }
 0x21b   : > { %v196_v37 = vsel %vm696_vm2, %v193_v36, %v195_v35 }
 0x21c   : > { %vm197_vm7 = vcmp.lt.s32.totalorder %v185_v31, %v196_v37  ;;  %vm199_vm8 = vcmp.gt.s32.totalorder %v185_v31, %v196_v37 }
 0x21d   : > { %v198_v38 = vsel %vm197_vm7, %v185_v31, %v196_v37  ;;  %v200_v39 = vsel %vm199_vm8, %v185_v31, %v196_v37  ;;  %vm233_vm7 = vcmp.eq.s32.totalorder %v232_v56, 0 }
 0x21e   : > { %v201_v40 = vsel %vm191_vm5, %v198_v38, %v200_v39  ;;  %vm231_vm5 = vcmp.eq.s32.totalorder %v230_v55, 0 }
 0x21f   : > { %208 = vrot.lane.b32.xlu1 %v201_v40, %s541_s27  ;;  %206 = vrot.lane.b32.xlu0 %v201_v40, %s540_s17 }
 0x291   : > { %v209_v42 = vpop.permute.xlu1 %208  ;;  %v207_v43 = vpop.permute.xlu0 %206 }
 0x292   : > { %v210_v44 = vsel %vm681_vm6, %v207_v43, %v209_v42 }
 0x293   : > { %vm211_vm12 = vcmp.lt.s32.totalorder %v201_v40, %v210_v44  ;;  %vm213_vm13 = vcmp.gt.s32.totalorder %v201_v40, %v210_v44 }
 0x294   : > { %v212_v45 = vsel %vm211_vm12, %v201_v40, %v210_v44  ;;  %v214_v46 = vsel %vm213_vm13, %v201_v40, %v210_v44  ;;  %vm261_vm13 = vcmp.eq.s32.totalorder %v260_v7, 0 }
 0x295   : > { %v215_v47 = vsel %vm205_vm11, %v212_v45, %v214_v46 }
 0x296   : > { %222 = vrot.lane.b32.xlu1 %v215_v47, %s539_s26  ;;  %220 = vrot.lane.b32.xlu0 %v215_v47, %s538_s25 }
 0x308   : > { %v223_v49 = vpop.permute.xlu1 %222  ;;  %v221_v50 = vpop.permute.xlu0 %220 }
 0x309   : > { %v224_v51 = vsel %vm671_vm0, %v221_v50, %v223_v49 }
 0x30a   : > { %vm225_vm3 = vcmp.lt.s32.totalorder %v215_v47, %v224_v51  ;;  %vm227_vm4 = vcmp.gt.s32.totalorder %v215_v47, %v224_v51 }
 0x30b   : > { %v226_v52 = vsel %vm225_vm3, %v215_v47, %v224_v51  ;;  %v228_v53 = vsel %vm227_vm4, %v215_v47, %v224_v51 }
 0x30c   : > { %v229_v54 = vsel %vm219_vm1, %v226_v52, %v228_v53 }
 0x30d   : > { %238 = vrot.lane.b32.xlu1 %v229_v54, %s544_s30  ;;  %236 = vrot.lane.b32.xlu0 %v229_v54, %s545_s2 }
 0x37f   : > { %v239_v57 = vpop.permute.xlu1 %238  ;;  %v237_v58 = vpop.permute.xlu0 %236 }
 0x380   : > { %v240_v59 = vsel %vm231_vm5, %v237_v58, %v239_v57 }
 0x381   : > { %vm241_vm8 = vcmp.lt.s32.totalorder %v229_v54, %v240_v59  ;;  %vm243_vm9 = vcmp.gt.s32.totalorder %v229_v54, %v240_v59 }
 0x382   : > { %v242_v60 = vsel %vm241_vm8, %v229_v54, %v240_v59  ;;  %v244_v61 = vsel %vm243_vm9, %v229_v54, %v240_v59 }
 0x383   : > { %v245_v62 = vsel %vm233_vm7, %v242_v60, %v244_v61 }
 0x384   : > { %252 = vrot.lane.b32.xlu1 %v245_v62, %s542_s28  ;;  %250 = vrot.lane.b32.xlu0 %v245_v62, %s543_s29 }
 0x3f6   : > { %v253_v0 = vpop.permute.xlu1 %252  ;;  %v251_v1 = vpop.permute.xlu0 %250 }
 0x3f7   : > { %v254_v2 = vsel %vm696_vm2, %v251_v1, %v253_v0  ;;  %vm275_vm2 = vcmp.eq.s32.totalorder %v274_v15, 0 }
 0x3f8   : > { %vm255_vm11 = vcmp.lt.s32.totalorder %v245_v62, %v254_v2  ;;  %vm257_vm12 = vcmp.gt.s32.totalorder %v245_v62, %v254_v2 }
 0x3f9   : > { %v256_v3 = vsel %vm255_vm11, %v245_v62, %v254_v2  ;;  %v258_v4 = vsel %vm257_vm12, %v245_v62, %v254_v2 }
 0x3fa   : > { %v259_v5 = vsel %vm247_vm10, %v256_v3, %v258_v4 }
 0x3fb   : > { %266 = vrot.lane.b32.xlu1 %v259_v5, %s541_s27  ;;  %264 = vrot.lane.b32.xlu0 %v259_v5, %s540_s17 }
 0x46d   : > { %v267_v8 = vpop.permute.xlu1 %266  ;;  %v265_v9 = vpop.permute.xlu0 %264 }
 0x46e   : > { %v268_v11 = vsel %vm681_vm6, %v265_v9, %v267_v8 }
 0x46f   : > { %vm269_vm14 = vcmp.lt.s32.totalorder %v259_v5, %v268_v11  ;;  %vm271_vm15 = vcmp.gt.s32.totalorder %v259_v5, %v268_v11 }
 0x470   : > { %v270_v12 = vsel %vm269_vm14, %v259_v5, %v268_v11  ;;  %v272_v13 = vsel %vm271_vm15, %v259_v5, %v268_v11 }
 0x471   : > { %v273_v14 = vsel %vm261_vm13, %v270_v12, %v272_v13 }
 0x472   : > { %280 = vrot.lane.b32.xlu1 %v273_v14, %s539_s26  ;;  %278 = vrot.lane.b32.xlu0 %v273_v14, %s538_s25 }
 0x4e4   : > { %v281_v16 = vpop.permute.xlu1 %280  ;;  %v279_v17 = vpop.permute.xlu0 %278 }
 0x4e5   : > { %v282_v18 = vsel %vm671_vm0, %v279_v17, %v281_v16 }
 0x4e6   : > { %vm283_vm6 = vcmp.lt.s32.totalorder %v273_v14, %v282_v18  ;;  %vm285_vm1 = vcmp.gt.s32.totalorder %v273_v14, %v282_v18 }
 0x4e7   : > { %v284_v19 = vsel %vm283_vm6, %v273_v14, %v282_v18  ;;  %v286_v20 = vsel %vm285_vm1, %v273_v14, %v282_v18 }
 0x4e8   : > { %v287_v21 = vsel %vm275_vm2, %v284_v19, %v286_v20 }
 0x4e9   : > { %v288_v22 = vshra.s32 %v287_v21, 31 }
 0x4eb   : > { %v289_v23 = vand.u32 2147483647, %v288_v22 }
 0x4ed   : > { %v290_v6 = vxor.u32 %v289_v23, %v287_v21 }
 0x4ef   : > { %292 = vst [vmem:[%s131_s4] sm:$0xff] %v290_v6 }
 0x4f0   : > { %484 = shalt.err (!%p481_p10)
}
 0x4f1   : > { %s485_s22 = scalar_lea.hbm %s305_s14, 128  ;;  %s489_s26 = scalar_lea.hbm %s767_s1, 256 }
 0x4f2   : > { %p486_p2 = scmp.ne.s32.totalorder %s305_s14, %s485_s22  ;;  %p490_p7 = scmp.lt.s32.totalorder %s305_s14, %s767_s1 }
 0x4f3   : > { %p491_p0 = scmp.lt.s32.totalorder %s489_s26, %s485_s22 }
 0x4f4   : > { %p487_p4 = pnand %p486_p2, %p784_p12 }
 0x4f5   : > { %p492_p6 = por %p491_p0, %p490_p7 }
 0x4f6   : > { %p488_p9 = pneg %p487_p4 }
 0x4f8   : > { %p493_p11 = pnand %p492_p6, %p488_p9 }
 0x4fa   : > { %496 = shalt.err (!%p493_p11)
}
 0x4fb   : > { %391 = dma.vmem_to_hbm [thread:$0]  (%p784_p12), %s308_s5, 128, %s305_s14, %s294_s16  }
 0x4fc PF: > { %s319_s28 = sand.u32 1, %s523_s6   ;;  %p785_p13 = scmp.ne.s32.totalorder %s773_s19, 0 }
 0x4fd   : > { %p786_p1 = scmp.ge.s32.totalorder %s535_s9, 2  ;;  %s320_s29 = scalar_lea.sflag [#allocation4], %s319_s28 }
 0x4ff   : > { %p398_p3 = pnand %p786_p1, %p785_p13 }
 0x501   : > { %p399_p5 = pneg %p398_p3 }
 0x503   : > { %518 = dma.done.wait (%p399_p5), %s320_s29, 128  }
 0x504   : > { %520 = vsyncadd (%p399_p5), %s320_s29, 4294967168  ;;  %p14_p8 = scmp.ge.s32.totalorder %s582_s12, 4   ;;  %s787_s6 = smov %s527_s7 }
 0x505   : > { %s788_s7 = smov %s531_s8  ;;  %s789_s8 = smov %s594_s15 }
 0x506   : > { %s790_s9 = smov %s582_s12  ;;  %16 = sbr.rel (!%p14_p8) target bundleno = 5 (0x5), region = 69 }
 0x50b   :  { %325 = vsyncpa [#allocation3], 1 }
 0x50c   :  { %327 = vsyncpa [#allocation3 + $0x1], 1 }
 0x50d   :  { %328 = vsyncpa [#allocation4], 1 }
 0x50e   :  { %330 = vsyncpa [#allocation4 + $0x1], 1 }

</bundles_post_ra>
